<compile_context>
chip_gen: v7x
topology: tpu7x:2x2x1
jax: 0.10.0
libtpu: 0.0.40
codegen_flags: <defaults>
</compile_context>

<pallas_src>
import jax
import jax.numpy as jnp
from jax.experimental import pallas as pl
from jax.experimental.pallas import tpu as pltpu

# ---------------- configuration (small, forward-consistent shapes) ----------
IMG_C, IMG_H, IMG_W = 3, 16, 16                      # tiny "image"
NUM_ANCHORS = 8                                      # detection proposals
DET_PATCH = (IMG_C * IMG_H * IMG_W) // NUM_ANCHORS   # 96 raw dims per anchor
DET_FEAT = 32                                        # backbone feature dim
NUM_KPS = 8                                          # 4 keypoints * (x, y)

FULL_ALPHABET = "0123456789ABCDEFGHIJKLMNOPQRSTUVWXYZ"
VOCAB_SIZE = len(FULL_ALPHABET) + 1                  # +1 blank, as in torch
BLANK_IDX = VOCAB_SIZE - 1

OCR_SEQ = 8                                          # sequence length (patches)
OCR_PATCH = (IMG_C * IMG_H * IMG_W) // OCR_SEQ       # 96 raw dims per patch
OCR_EMBED = 32                                       # embed_dim
NUM_BOXES = 2                                        # boxes fed to OCR (fixed)

LANE = 128                                           # TPU lane width
PAD_K = 128                                          # contraction dim, padded
VOCAB_PAD = 128                                      # vocab lane dim, padded
HEAD_DIM = 1 + 4 + NUM_KPS                           # score | bbox | kps = 13
OCR_ROWS = NUM_BOXES * OCR_SEQ                       # 16

# TODO(synk): score_thr filtering + NMS produce a data-dependent number of
# boxes; here a fixed in-kernel top-2 selection stands in for them.
# TODO(synk): PIL resize/crop transforms and checkpoint loading have no Pallas
# equivalent and are replaced by a deterministic patchify of the input image.
# TODO(synk): indices_to_text drops blanks but does not collapse repeats
# (not a full CTC decode), matching the simplified reference behaviour.


# ---------------- fused detection + top-k + OCR kernel ----------------------
def alpr_kernel(x_ref, w1_ref, det_wh_ref, ocr_wc_ref, sel_ref, lp_ref):
    # ---- fused stage-1 matmul: [det backbone | ocr patch-embed] -------------
    # shared input carries a constant-1 bias lane at column DET_PATCH (=96);
    # row 96 of w1 holds the (zero) stage-1 biases -> biases folded for free.
    x16 = x_ref[...].astype(jnp.bfloat16)                               # (A, 128)
    stage1 = jnp.dot(x16, w1_ref[...],
                     preferred_element_type=jnp.float32)                # (A, 64)
    feat = jnp.tanh(stage1[:, :DET_FEAT])                               # (A, 32)
    pre = stage1[:, DET_FEAT:DET_FEAT + OCR_EMBED]                      # (S, 32)

    # ---- detection: one fused lane-dense head matmul ------------------------
    # columns: 0 = score, 1..4 = bbox (l,t,r,b), 5..12 = kps, rest padding.
    # post-sigmoid per-column scale is a config constant (score->1,
    # coords->IMG_W==IMG_H, padding->0) built from an iota, no extra input.
    lane = jax.lax.broadcasted_iota(jnp.int32, (1, LANE), 1)
    head_scale = jnp.where(lane == 0, 1.0,
                           jnp.where(lane < HEAD_DIM, float(IMG_W), 0.0))
    det_slab = jax.nn.sigmoid(
        jnp.dot(feat.astype(jnp.bfloat16), det_wh_ref[...],
                preferred_element_type=jnp.float32)) * head_scale       # (A, 128)

    # ---- in-kernel top-2 anchor selection (scores live in lane 0) -----------
    scores = det_slab[:, 0:1]                                           # (A, 1)
    row_f = jax.lax.broadcasted_iota(
        jnp.int32, (NUM_ANCHORS, 1), 0).astype(jnp.float32)
    m1 = jnp.max(scores, axis=0, keepdims=True)
    idx1 = jnp.min(jnp.where(scores >= m1, row_f, float(NUM_ANCHORS)),
                   axis=0, keepdims=True)                               # (1, 1)
    masked = jnp.where(row_f == idx1, -jnp.inf, scores)
    m2 = jnp.max(masked, axis=0, keepdims=True)
    idx2 = jnp.min(jnp.where(masked >= m2, row_f, float(NUM_ANCHORS)),
                   axis=0, keepdims=True)                               # (1, 1)
    mask1 = row_f == idx1                                               # (A, 1)
    mask2 = row_f == idx2

    # per-selected-box conditioning scalar: 0.01 * sum(bbox coords), computed
    # with VPU masks + sublane reductions (keeps the MXU off the det->OCR
    # serial chain).
    rowsum = jnp.sum(det_slab[:, 1:5], axis=1, keepdims=True)           # (A, 1)
    cond1 = jnp.sum(jnp.where(mask1, rowsum, 0.0), axis=0,
                    keepdims=True) * 0.01                               # (1, 1)
    cond2 = jnp.sum(jnp.where(mask2, rowsum, 0.0), axis=0,
                    keepdims=True) * 0.01                               # (1, 1)

    # selected anchor rows (box 0, box 1) gathered by masked sublane reduce;
    # one full unmasked (8, 128) store (rows 2..7 are zero padding).
    sel0 = jnp.sum(jnp.where(mask1, det_slab, 0.0), axis=0, keepdims=True)
    sel1 = jnp.sum(jnp.where(mask2, det_slab, 0.0), axis=0, keepdims=True)
    sel_ref[...] = jnp.concatenate(
        [sel0, sel1,
         jnp.zeros((NUM_ANCHORS - NUM_BOXES, LANE), jnp.float32)], axis=0)

    # ---- OCR: per-box conditioning, one tanh, one classifier matmul ---------
    emb = jnp.tanh(jnp.concatenate([pre + cond1, pre + cond2], axis=0))  # (B*S, E)
    logits = jnp.dot(emb.astype(jnp.bfloat16), ocr_wc_ref[...],
                     preferred_element_type=jnp.float32)                 # (B*S, 128)
    # padded vocab lanes masked to -1e30 so they never affect the
    # log_softmax normalisation nor the (host-side) argmax.
    vlane = jax.lax.broadcasted_iota(jnp.int32, logits.shape, 1)
    logits = jnp.where(vlane < VOCAB_SIZE, logits, -1e30)
    m = jnp.max(logits, axis=-1, keepdims=True)
    lse = jnp.log(jnp.sum(jnp.exp(logits - m), axis=-1, keepdims=True)) + m
    lp_ref[...] = logits - lse                                           # (B*S, 128)


def run_alpr_fused(shared_in, params):
    # Single-shot kernel: no grid, whole-array VMEM blocks (nothing to
    # pipeline, so no double-buffering / prologue overhead).
    vmem = pltpu.MemorySpace.VMEM
    return pl.pallas_call(
        alpr_kernel,
        in_specs=[pl.BlockSpec(memory_space=vmem)] * 4,
        out_specs=(pl.BlockSpec(memory_space=vmem),
                   pl.BlockSpec(memory_space=vmem)),
        out_shape=(jax.ShapeDtypeStruct((NUM_ANCHORS, LANE), jnp.float32),
                   jax.ShapeDtypeStruct((OCR_ROWS, VOCAB_PAD), jnp.float32)),
    )(shared_in, params["w1"], params["det_wh"], params["ocr_wc"])


# ---------------- parameters --------------------------------------------------
def make_params(key):
    ks = jax.random.split(key, 6)
    n = lambda k, shape, scale: jax.random.normal(k, shape, jnp.float32) * scale

    # stage-1 weights: det backbone projection and OCR patch embed, K padded
    # 96 -> 128 with zero rows; the (zero) biases are folded into row 96,
    # which multiplies the constant-1 bias lane of the shared input.
    det_w0 = jnp.zeros((PAD_K, DET_FEAT), jnp.float32
                       ).at[:DET_PATCH].set(n(ks[0], (DET_PATCH, DET_FEAT), 0.05))
    ocr_we = jnp.zeros((PAD_K, OCR_EMBED), jnp.float32
                       ).at[:OCR_PATCH].set(n(ks[4], (OCR_PATCH, OCR_EMBED), 0.05))
    det_b0 = jnp.zeros((DET_FEAT,), jnp.float32)
    ocr_be = jnp.zeros((OCR_EMBED,), jnp.float32)
    det_w0 = det_w0.at[DET_PATCH].set(det_b0)
    ocr_we = ocr_we.at[OCR_PATCH].set(ocr_be)
    # fused stage-1 weight: columns 0:32 -> det feat, 32:64 -> ocr pre
    w1 = jnp.concatenate([det_w0, ocr_we], axis=1).astype(jnp.bfloat16)  # (128, 64)

    # fused detection heads: [score | bbox(4) | kps(8)] packed into 128 lanes
    ws = n(ks[1], (DET_FEAT, 1), 0.1)
    wb = n(ks[2], (DET_FEAT, 4), 0.1)
    wk = n(ks[3], (DET_FEAT, NUM_KPS), 0.1)
    det_wh = jnp.zeros((DET_FEAT, LANE), jnp.float32
                       ).at[:, :HEAD_DIM].set(
                           jnp.concatenate([ws, wb, wk], axis=1)
                       ).astype(jnp.bfloat16)                            # (32, 128)

    # OCR classifier (vocab padded to 128; padded lanes are masked in-kernel)
    ocr_wc = jnp.zeros((OCR_EMBED, VOCAB_PAD), jnp.float32
                       ).at[:, :VOCAB_SIZE].set(
                           n(ks[5], (OCR_EMBED, VOCAB_SIZE), 0.1)
                       ).astype(jnp.bfloat16)                            # (32, 128)

    return {"w1": w1, "det_wh": det_wh, "ocr_wc": ocr_wc}


# ---------------- glue ---------------------------------------------------------
def indices_to_text(indices, vocab):
    # CTC-style: drop blanks, keep others (no repeat collapse, see TODO above).
    return "".join(vocab[int(i)] for i in indices if int(i) < len(vocab))


@jax.jit
def alpr_device_forward(image_nchw, params):
    # detection_data_transform / ocr_data_transform replacement: the identical
    # deterministic patchify feeds both heads (one shared (8,128) slab), with a
    # constant-1 bias lane at column 96 and zero padding beyond.
    img = image_nchw[0]                                              # (C, H, W)
    patches = img.reshape(NUM_ANCHORS, DET_PATCH)                    # (8, 96)
    shared = jnp.concatenate(
        [patches,
         jnp.ones((NUM_ANCHORS, 1), jnp.float32),
         jnp.zeros((NUM_ANCHORS, PAD_K - DET_PATCH - 1), jnp.float32)],
        axis=1)                                                      # (8, 128)

    sel_out, lp2d = run_alpr_fused(shared, params)

    sel_boxes = sel_out[:NUM_BOXES, 1:5]                             # (B, 4)
    sel_kps = sel_out[:NUM_BOXES, 5:5 + NUM_KPS]                     # (B, 8)
    log_ocrs = lp2d.reshape(NUM_BOXES, OCR_SEQ, VOCAB_PAD)[:, :, :VOCAB_SIZE]
    # argmax over the 37 real vocab columns (first-occurrence tie-break, same
    # as torch.argmax); done XLA-side to avoid a third kernel output DMA.
    ocr_idx = jnp.argmax(log_ocrs, axis=-1)                          # (B, S)
    return sel_boxes, sel_kps, log_ocrs, ocr_idx


def alpr_forward(image_nchw, params):
    outs = alpr_device_forward(image_nchw, params)
    sel_boxes, sel_kps, log_ocrs, ocr_idx = jax.tree.map(
        jax.block_until_ready, outs)
    bbox_res, ocr_res, kps_res = [], [], []
    boxes_np = jax.device_get(sel_boxes)
    kps_np = jax.device_get(sel_kps)
    idx_np = jax.device_get(ocr_idx)
    for i in range(boxes_np.shape[0]):
        l, t, r, b = boxes_np[i]
        evens = kps_np[i][::2].tolist()
        odds = kps_np[i][1::2].tolist()
        kps_res.append(list(zip(evens, odds)))
        ocr_res.append(indices_to_text(idx_np[i], FULL_ALPHABET))
        bbox_res.append((int(l), int(t), int(r), int(b)))
    return bbox_res, ocr_res, kps_res, log_ocrs


if __name__ == "__main__":
    key = jax.random.PRNGKey(0)
    k_img, k_par = jax.random.split(key)
    image = jax.random.uniform(k_img, (1, IMG_C, IMG_H, IMG_W), jnp.float32)
    params = make_params(k_par)

    bbox_res, ocr_res, kps_res, log_ocrs = alpr_forward(image, params)
    jax.block_until_ready(log_ocrs)

    assert len(bbox_res) == NUM_BOXES
    assert len(ocr_res) == NUM_BOXES
    assert len(kps_res) == NUM_BOXES and len(kps_res[0]) == NUM_KPS // 2
    assert log_ocrs.shape == (NUM_BOXES, OCR_SEQ, VOCAB_SIZE)
    # log_softmax sanity: rows sum to ~1 in prob space (padded vocab columns
    # are masked to -1e30 in-kernel, so they contribute nothing)
    assert bool(jnp.allclose(jnp.exp(log_ocrs).sum(-1), 1.0, atol=1e-4))
    print("KERNEL_OK")
</pallas_src>

<mosaic_0001>
module attributes {stable_mosaic.version = 11 : i64} {
  func.func @alpr_kernel(%arg0: memref<8x128xf32, #tpu.memory_space<vmem>>, %arg1: memref<128x64xbf16, #tpu.memory_space<vmem>>, %arg2: memref<32x128xbf16, #tpu.memory_space<vmem>>, %arg3: memref<32x128xbf16, #tpu.memory_space<vmem>>, %arg4: memref<8x128xf32, #tpu.memory_space<vmem>>, %arg5: memref<16x128xf32, #tpu.memory_space<vmem>>) attributes {dimension_semantics = [], scalar_prefetch = 0 : i64, scratch_operands = 0 : i64, tpu.core_type = #tpu.core_type<tc>} {
    %c0 = arith.constant 0 : index
    %c0_0 = arith.constant 0 : index
    %0 = vector.load %arg0[%c0, %c0_0] : memref<8x128xf32, #tpu.memory_space<vmem>>, vector<8x128xf32>
    %1 = arith.truncf %0 : vector<8x128xf32> to vector<8x128xbf16>
    %c0_1 = arith.constant 0 : index
    %c0_2 = arith.constant 0 : index
    %2 = vector.load %arg1[%c0_1, %c0_2] : memref<128x64xbf16, #tpu.memory_space<vmem>>, vector<128x64xbf16>
    %cst = arith.constant dense<0.000000e+00> : vector<8x64xf32>
    %3 = tpu.matmul %1, %2, %cst {dimension_numbers = #tpu.dot_dimension_numbers<[1], [0], [0], [1], [0, 0, 1, 1], [], []>} : vector<8x128xbf16>, vector<128x64xbf16>, vector<8x64xf32> -> vector<8x64xf32>
    %4 = vector.extract_strided_slice %3 {offsets = [0, 0], sizes = [8, 32], strides = [1, 1]} : vector<8x64xf32> to vector<8x32xf32>
    %5 = math.tanh %4 : vector<8x32xf32>
    %6 = vector.extract_strided_slice %3 {offsets = [0, 32], sizes = [8, 32], strides = [1, 1]} : vector<8x64xf32> to vector<8x32xf32>
    %7 = tpu.iota {dimensions = array<i32: 1>} : vector<1x128xi32>
    %c0_i32 = arith.constant 0 : i32
    %8 = vector.broadcast %c0_i32 : i32 to vector<1x128xi32>
    %9 = arith.cmpi eq, %7, %8 : vector<1x128xi32>
    %c13_i32 = arith.constant 13 : i32
    %10 = vector.broadcast %c13_i32 : i32 to vector<1x128xi32>
    %11 = arith.cmpi slt, %7, %10 : vector<1x128xi32>
    %cst_3 = arith.constant 1.600000e+01 : f32
    %cst_4 = arith.constant 0.000000e+00 : f32
    %12 = vector.broadcast %cst_3 : f32 to vector<1x128xf32>
    %13 = vector.broadcast %cst_4 : f32 to vector<1x128xf32>
    %14 = arith.select %11, %12, %13 : vector<1x128xi1>, vector<1x128xf32>
    %cst_5 = arith.constant 1.000000e+00 : f32
    %15 = vector.broadcast %cst_5 : f32 to vector<1x128xf32>
    %16 = arith.select %9, %15, %14 : vector<1x128xi1>, vector<1x128xf32>
    %17 = arith.truncf %5 : vector<8x32xf32> to vector<8x32xbf16>
    %c0_6 = arith.constant 0 : index
    %c0_7 = arith.constant 0 : index
    %18 = vector.load %arg2[%c0_6, %c0_7] : memref<32x128xbf16, #tpu.memory_space<vmem>>, vector<32x128xbf16>
    %cst_8 = arith.constant dense<0.000000e+00> : vector<8x128xf32>
    %19 = tpu.matmul %17, %18, %cst_8 {dimension_numbers = #tpu.dot_dimension_numbers<[1], [0], [0], [1], [0, 0, 1, 1], [], []>} : vector<8x32xbf16>, vector<32x128xbf16>, vector<8x128xf32> -> vector<8x128xf32>
    %20 = arith.negf %19 : vector<8x128xf32>
    %21 = math.exp %20 : vector<8x128xf32>
    %cst_9 = arith.constant 1.000000e+00 : f32
    %22 = vector.broadcast %cst_9 : f32 to vector<8x128xf32>
    %23 = arith.addf %22, %21 : vector<8x128xf32>
    %24 = arith.divf %22, %23 : vector<8x128xf32>
    %25 = vector.broadcast %16 : vector<1x128xf32> to vector<8x128xf32>
    %26 = arith.mulf %24, %25 : vector<8x128xf32>
    %27 = vector.extract_strided_slice %26 {offsets = [0, 0], sizes = [8, 1], strides = [1, 1]} : vector<8x128xf32> to vector<8x1xf32>
    %28 = tpu.iota {dimensions = array<i32: 0>} : vector<8x1xi32>
    %29 = arith.sitofp %28 : vector<8x1xi32> to vector<8x1xf32>
    %cst_10 = arith.constant dense<0xFF800000> : vector<1xf32>
    %30 = vector.multi_reduction <maximumf>, %27, %cst_10 [0] : vector<8x1xf32> to vector<1xf32>
    %31 = vector.shape_cast %30 : vector<1xf32> to vector<1x1xf32>
    %32 = vector.broadcast %31 : vector<1x1xf32> to vector<8x1xf32>
    %33 = arith.cmpf oge, %27, %32 : vector<8x1xf32>
    %cst_11 = arith.constant 8.000000e+00 : f32
    %34 = vector.broadcast %cst_11 : f32 to vector<8x1xf32>
    %35 = arith.select %33, %29, %34 : vector<8x1xi1>, vector<8x1xf32>
    %cst_12 = arith.constant dense<0x7F800000> : vector<1xf32>
    %36 = vector.multi_reduction <minimumf>, %35, %cst_12 [0] : vector<8x1xf32> to vector<1xf32>
    %37 = vector.shape_cast %36 : vector<1xf32> to vector<1x1xf32>
    %38 = vector.broadcast %37 : vector<1x1xf32> to vector<8x1xf32>
    %39 = arith.cmpf oeq, %29, %38 : vector<8x1xf32>
    %cst_13 = arith.constant 0xFF800000 : f32
    %40 = vector.broadcast %cst_13 : f32 to vector<8x1xf32>
    %41 = arith.select %39, %40, %27 : vector<8x1xi1>, vector<8x1xf32>
    %cst_14 = arith.constant dense<0xFF800000> : vector<1xf32>
    %42 = vector.multi_reduction <maximumf>, %41, %cst_14 [0] : vector<8x1xf32> to vector<1xf32>
    %43 = vector.shape_cast %42 : vector<1xf32> to vector<1x1xf32>
    %44 = vector.broadcast %43 : vector<1x1xf32> to vector<8x1xf32>
    %45 = arith.cmpf oge, %41, %44 : vector<8x1xf32>
    %cst_15 = arith.constant 8.000000e+00 : f32
    %46 = vector.broadcast %cst_15 : f32 to vector<8x1xf32>
    %47 = arith.select %45, %29, %46 : vector<8x1xi1>, vector<8x1xf32>
    %cst_16 = arith.constant dense<0x7F800000> : vector<1xf32>
    %48 = vector.multi_reduction <minimumf>, %47, %cst_16 [0] : vector<8x1xf32> to vector<1xf32>
    %49 = vector.shape_cast %48 : vector<1xf32> to vector<1x1xf32>
    %50 = vector.broadcast %37 : vector<1x1xf32> to vector<8x1xf32>
    %51 = arith.cmpf oeq, %29, %50 : vector<8x1xf32>
    %52 = vector.broadcast %49 : vector<1x1xf32> to vector<8x1xf32>
    %53 = arith.cmpf oeq, %29, %52 : vector<8x1xf32>
    %54 = vector.extract_strided_slice %26 {offsets = [0, 1], sizes = [8, 4], strides = [1, 1]} : vector<8x128xf32> to vector<8x4xf32>
    %cst_17 = arith.constant dense<0.000000e+00> : vector<8xf32>
    %55 = vector.multi_reduction <add>, %54, %cst_17 [1] : vector<8x4xf32> to vector<8xf32>
    %56 = vector.shape_cast %55 : vector<8xf32> to vector<8x1xf32>
    %cst_18 = arith.constant 0.000000e+00 : f32
    %57 = vector.broadcast %cst_18 : f32 to vector<8x1xf32>
    %58 = arith.select %51, %56, %57 : vector<8x1xi1>, vector<8x1xf32>
    %cst_19 = arith.constant dense<0.000000e+00> : vector<1xf32>
    %59 = vector.multi_reduction <add>, %58, %cst_19 [0] : vector<8x1xf32> to vector<1xf32>
    %60 = vector.shape_cast %59 : vector<1xf32> to vector<1x1xf32>
    %cst_20 = arith.constant 0.00999999977 : f32
    %61 = vector.broadcast %cst_20 : f32 to vector<1x1xf32>
    %62 = arith.mulf %60, %61 : vector<1x1xf32>
    %cst_21 = arith.constant 0.000000e+00 : f32
    %63 = vector.broadcast %cst_21 : f32 to vector<8x1xf32>
    %64 = arith.select %53, %56, %63 : vector<8x1xi1>, vector<8x1xf32>
    %cst_22 = arith.constant dense<0.000000e+00> : vector<1xf32>
    %65 = vector.multi_reduction <add>, %64, %cst_22 [0] : vector<8x1xf32> to vector<1xf32>
    %66 = vector.shape_cast %65 : vector<1xf32> to vector<1x1xf32>
    %cst_23 = arith.constant 0.00999999977 : f32
    %67 = vector.broadcast %cst_23 : f32 to vector<1x1xf32>
    %68 = arith.mulf %66, %67 : vector<1x1xf32>
    %cst_24 = arith.constant 0.000000e+00 : f32
    %69 = vector.shape_cast %51 : vector<8x1xi1> to vector<8x1xi1>
    %70 = vector.broadcast %69 : vector<8x1xi1> to vector<8x128xi1>
    %71 = vector.broadcast %cst_24 : f32 to vector<8x128xf32>
    %72 = arith.select %70, %26, %71 : vector<8x128xi1>, vector<8x128xf32>
    %cst_25 = arith.constant dense<0.000000e+00> : vector<128xf32>
    %73 = vector.multi_reduction <add>, %72, %cst_25 [0] : vector<8x128xf32> to vector<128xf32>
    %74 = vector.shape_cast %73 : vector<128xf32> to vector<1x128xf32>
    %cst_26 = arith.constant 0.000000e+00 : f32
    %75 = vector.shape_cast %53 : vector<8x1xi1> to vector<8x1xi1>
    %76 = vector.broadcast %75 : vector<8x1xi1> to vector<8x128xi1>
    %77 = vector.broadcast %cst_26 : f32 to vector<8x128xf32>
    %78 = arith.select %76, %26, %77 : vector<8x128xi1>, vector<8x128xf32>
    %cst_27 = arith.constant dense<0.000000e+00> : vector<128xf32>
    %79 = vector.multi_reduction <add>, %78, %cst_27 [0] : vector<8x128xf32> to vector<128xf32>
    %80 = vector.shape_cast %79 : vector<128xf32> to vector<1x128xf32>
    %cst_28 = arith.constant 0.000000e+00 : f32
    %81 = vector.broadcast %cst_28 : f32 to vector<6x128xf32>
    %82 = tpu.concatenate %74, %80, %81 in 0 : vector<1x128xf32>, vector<1x128xf32>, vector<6x128xf32> -> vector<8x128xf32>
    %c0_29 = arith.constant 0 : index
    %c0_30 = arith.constant 0 : index
    %83 = vector.load %arg4[%c0_29, %c0_30] : memref<8x128xf32, #tpu.memory_space<vmem>>, vector<8x128xf32>
    tpu.vector_store %arg4[%c0_29, %c0_30], %82 {strides = array<i32>} : memref<8x128xf32, #tpu.memory_space<vmem>>, vector<8x128xf32>,
    %84 = vector.broadcast %62 : vector<1x1xf32> to vector<8x32xf32>
    %85 = arith.addf %6, %84 : vector<8x32xf32>
    %86 = vector.broadcast %68 : vector<1x1xf32> to vector<8x32xf32>
    %87 = arith.addf %6, %86 : vector<8x32xf32>
    %88 = tpu.concatenate %85, %87 in 0 : vector<8x32xf32>, vector<8x32xf32> -> vector<16x32xf32>
    %89 = math.tanh %88 : vector<16x32xf32>
    %90 = arith.truncf %89 : vector<16x32xf32> to vector<16x32xbf16>
    %c0_31 = arith.constant 0 : index
    %c0_32 = arith.constant 0 : index
    %91 = vector.load %arg3[%c0_31, %c0_32] : memref<32x128xbf16, #tpu.memory_space<vmem>>, vector<32x128xbf16>
    %cst_33 = arith.constant dense<0.000000e+00> : vector<16x128xf32>
    %92 = tpu.matmul %90, %91, %cst_33 {dimension_numbers = #tpu.dot_dimension_numbers<[1], [0], [0], [1], [0, 0, 1, 1], [], []>} : vector<16x32xbf16>, vector<32x128xbf16>, vector<16x128xf32> -> vector<16x128xf32>
    %93 = tpu.iota {dimensions = array<i32: 1>} : vector<16x128xi32>
    %c37_i32 = arith.constant 37 : i32
    %94 = vector.broadcast %c37_i32 : i32 to vector<16x128xi32>
    %95 = arith.cmpi slt, %93, %94 : vector<16x128xi32>
    %cst_34 = arith.constant -1.000000e+30 : f32
    %96 = vector.broadcast %cst_34 : f32 to vector<16x128xf32>
    %97 = arith.select %95, %92, %96 : vector<16x128xi1>, vector<16x128xf32>
    %cst_35 = arith.constant dense<0xFF800000> : vector<16xf32>
    %98 = vector.multi_reduction <maximumf>, %97, %cst_35 [1] : vector<16x128xf32> to vector<16xf32>
    %99 = vector.shape_cast %98 : vector<16xf32> to vector<16x1xf32>
    %100 = vector.broadcast %99 : vector<16x1xf32> to vector<16x128xf32>
    %101 = arith.subf %97, %100 : vector<16x128xf32>
    %102 = math.exp %101 : vector<16x128xf32>
    %cst_36 = arith.constant dense<0.000000e+00> : vector<16xf32>
    %103 = vector.multi_reduction <add>, %102, %cst_36 [1] : vector<16x128xf32> to vector<16xf32>
    %104 = vector.shape_cast %103 : vector<16xf32> to vector<16x1xf32>
    %105 = math.log %104 : vector<16x1xf32>
    %106 = arith.addf %105, %99 : vector<16x1xf32>
    %107 = vector.broadcast %106 : vector<16x1xf32> to vector<16x128xf32>
    %108 = arith.subf %97, %107 : vector<16x128xf32>
    %c0_37 = arith.constant 0 : index
    %c0_38 = arith.constant 0 : index
    %109 = vector.load %arg5[%c0_37, %c0_38] : memref<16x128xf32, #tpu.memory_space<vmem>>, vector<16x128xf32>
    tpu.vector_store %arg5[%c0_37, %c0_38], %108 {strides = array<i32>} : memref<16x128xf32, #tpu.memory_space<vmem>>, vector<16x128xf32>,
    return
  }
}

</mosaic_0001>

<bundles_post_ra>
// kernel: squeeze.1
= control target key start
LH: loop header
LB: loop body
LE: loop exit
PB: predicated region body
PF: predicated region fallthrough
CT: control target
= control target key end

     0   :  { %2 = vsyncpa [#allocation1], 0  ;;  %s76_s6 = smov [#allocation0]   ;;  %s122_s0 = inlined_call_operand.hbm [shape: f32[1,3,16,16], index: 0, kind: input, shape index: {}]   ;;  %s123_s1 = inlined_call_operand.vmem [shape: f32[8,96], index: 1, kind: output, shape index: {}]  }
   0x1   :  { %s7_s7 = sshll.u32 %s76_s6, 4  ;;  %s52_s10 = scalar_lea.hbm %s122_s0, 768  ;;  %s8_s7 = int_to_ptr.vmem [resolvable:$true] %s7_s7 }
   0x2   :  { %p53_p0 = scmp.ne.s32.totalorder %s122_s0, %s52_s10  ;;  %p56_p1 = scmp.lt.u32.totalorder %s52_s10, %s122_s0 }
   0x4   :  { %p58_p2 = pnand %p56_p1, %p53_p0 }
   0x6   :  { %61 = shalt.err (!%p58_p2)
}
   0x7   :  { %s62_s15 = scalar_lea.vmem %s8_s7, 768  ;;  %p67_p4 = scmp.lt.s32.totalorder %s8_s7, %s8_s7 }
   0x8   :  { %p63_p3 = scmp.ne.s32.totalorder %s8_s7, %s62_s15  ;;  %p68_p5 = scmp.lt.s32.totalorder %s62_s15, %s62_s15 }
   0xa   :  { %p69_p6 = por %p68_p5, %p67_p4 }
   0xc   :  { %p70_p7 = pnand %p69_p6, %p63_p3 }
   0xe   :  { %73 = shalt.err (!%p70_p7)
}
   0xf   :  { %10 = dma.hbm_to_vmem [thread:$0]  %s122_s0, 768, %s8_s7, [#allocation1]  }
  0x10   :  { %74 = dma.done.wait [#allocation1], 768  }
  0x11   :  { %75 = vsyncadd [#allocation1], 4294966528  ;;  %vm13_vm0 = vcmask 130048   ;;  %v16_v0 = vld [vmem:[#allocation0 + $0x5] ss:$6 sm:$0xff]   ;;  %s77_s0 = smov 80  }
  0x12   :  { %v28_v1 = vld [vmem:[#allocation0 + $0x3] ss:$6 sm:$0xff]   ;;  %17 = vrot.lane.b32.xlu0 %v16_v0, %s77_s0  ;;  %s78_s18 = smov 48   ;;  %v12_v2 = vld [vmem:[#allocation0] ss:$6 sm:$0xff]   ;;  %s79_s21 = smov 64  }
  0x13   :  { %29 = vrot.lane.b32.xlu1 %v28_v1, %s78_s18  ;;  %v22_v3 = vld [vmem:[#allocation0 + $0x4] ss:$6 sm:$0xff]   ;;  %14 = vst.msk [vmem:[%s123_s1] sm:$0xff] %vm13_vm0, %v12_v2   ;;  %s80_s22 = smov 32   ;;  %v40_v5 = vld [vmem:[#allocation0 + $0x1] ss:$6 sm:$0xff]  }
  0x14   :  { %v34_v4 = vld [vmem:[#allocation0 + $0x2] ss:$6 sm:$0xff]   ;;  %s81_s23 = smov 16   ;;  %vm19_vm1 = vcmask 786048   ;;  %vm25_vm2 = vcmask 654848   ;;  %vm31_vm3 = vcmask 523648  }
  0x15   :  { %vm37_vm4 = vcmask 392448   ;;  %vm43_vm5 = vcmask 261248  }
  0x16   :  { %23 = vrot.lane.b32.xlu0 %v22_v3, %s79_s21 }
  0x17   :  { %35 = vrot.lane.b32.xlu1 %v34_v4, %s80_s22 }
  0x1a   :  { %41 = vrot.lane.b32.xlu0 %v40_v5, %s81_s23 }
  0x84   :  { %v18_v6 = vpop.permute.xlu0 %17  }
  0x85   :  { %v30_v7 = vpop.permute.xlu1 %29   ;;  %20 = vst.msk [vmem:[%s123_s1] sm:$0xff] %vm19_vm1, %v18_v6  }
  0x88   :  { %v24_v8 = vpop.permute.xlu0 %23  }
  0x89   :  { %v36_v9 = vpop.permute.xlu1 %35   ;;  %26 = vst.msk [vmem:[%s123_s1] sm:$0xff] %vm25_vm2, %v24_v8  }
  0x8a   :  { %32 = vst.msk [vmem:[%s123_s1] sm:$0xff] %vm31_vm3, %v30_v7  }
  0x8b   :  { %38 = vst.msk [vmem:[%s123_s1] sm:$0xff] %vm37_vm4, %v36_v9  }
  0x8c   :  { %v42_v10 = vpop.permute.xlu0 %41  }
  0x8d   :  { %44 = vst.msk [vmem:[%s123_s1] sm:$0xff] %vm43_vm5, %v42_v10  }
  0x8e   :  { %45 = vsyncpa [#allocation1], 1 }

// kernel: alpr_device_forward.1
= control target key start
LH: loop header
LB: loop body
LE: loop exit
PB: predicated region body
PF: predicated region fallthrough
CT: control target
= control target key end

     0   :  { %v511_v0 = vmov 0.0   ;;  %vm512_vm0 = vmmov 0   ;;  %vm150_vm1 = vcmask 261120   ;;  %v513_v19 = vmov 0   ;;  %s515_s17 = smov 96   ;;  %s665_s1 = inlined_call_operand.vmem [shape: bf16[128,64], index: 1, kind: input, shape index: {}]   ;;  %s666_s0 = inlined_call_operand.vmem [shape: f32[8,128], index: 0, kind: input, shape index: {}]   ;;  %s667_s2 = inlined_call_operand.vmem [shape: bf16[32,128], index: 2, kind: input, shape index: {}]   ;;  %s668_s3 = inlined_call_operand.vmem [shape: bf16[32,128], index: 3, kind: input, shape index: {}]   ;;  %s669_s5 = inlined_call_operand.vmem [shape: f32[16,128], index: 5, kind: output, shape index: {1}]   ;;  %s670_s4 = inlined_call_operand.vmem [shape: f32[8,128], index: 4, kind: output, shape index: {0}]  }
   0x1   :  { %438 = vmatprep.subr.bf16.mxu0 %v511_v0  ;;  %v481_v1 = vld [vmem:[%s665_s1] sm:$0xff]   ;;  %454 = vmatprep.mubr.msk.bf16.mxu0 %vm512_vm0, %v511_v0  ;;  %v482_v2 = vld [vmem:[%s665_s1 + $0x8] sm:$0xff]   ;;  %v483_v3 = vld [vmem:[%s665_s1 + $0x10] sm:$0xff]   ;;  %v127_v25 = vlaneseq  ;;  %vm244_vm4 = vcmask 31744   ;;  %vm204_vm5 = vcmask 7168   ;;  %vm290_vm13 = vcmask 1040384  }
   0x2   :  { %458 = vmatprep.subr.bf16.mxu1 %v511_v0  ;;  %462 = vmatprep.mubr.msk.bf16.mxu1 %vm512_vm0, %v511_v0  ;;  %v484_v4 = vld [vmem:[%s665_s1 + $0x18] sm:$0xff]   ;;  %v485_v5 = vld [vmem:[%s665_s1 + $0x20] sm:$0xff]   ;;  %v486_v6 = vld [vmem:[%s665_s1 + $0x28] sm:$0xff]   ;;  %vm292_vm14 = vcmask 1041408  }
   0x3   :  { %439 = vmatpush3.bf16.msra.mxu0 %v481_v1  ;;  %v487_v7 = vld [vmem:[%s665_s1 + $0x30] sm:$0xff]   ;;  %v488_v8 = vld [vmem:[%s665_s1 + $0x38] sm:$0xff]   ;;  %v20_v9 = vld [vmem:[%s666_s0] sm:$0xff]  ;;  %479 = vset.pattern.permute.xlu1 %v513_v19  ;;  %v602_v27 = vand.u32 127, %v127_v25  ;;  %s514_s0 = smov 127   ;;  %v202_v41 = vshrl.u32 %v127_v25, 7 }
   0x4   :  { %440 = vmatprep.subr.bf16.mxu0 %v511_v0  ;;  %v21_v10 = vpack.c.bf16 %v20_v9, %v20_v9  ;;  %v489_v11 = vld [vmem:[%s667_s2] sm:$0xff]   ;;  %v490_v12 = vld [vmem:[%s667_s2 + $0x8] sm:$0xff]   ;;  %480 = vset.pattern.permute.xlu0 %v513_v19 }
   0x5   :  { %459 = vmatpush3.bf16.msra.mxu1 %v489_v11  ;;  %vm130_vm2 = vcmp.lt.s32.totalorder %v602_v27, 13  ;;  %vm129_vm3 = vcmp.eq.s32.totalorder %v602_v27, 0  ;;  %v612_v43 = vcvt.s32.f32 %v202_v41  ;;  %vm373_vm10 = vcmp.lt.s32.totalorder %v602_v27, 37 }
   0x6   :  { %460 = vmatprep.subr.bf16.mxu1 %v511_v0  ;;  %v131_v29 = vsel %vm130_vm2, 16.0, %v511_v0 }
   0x7   :  { %441 = vmatpush3.bf16.msra.mxu0 %v482_v2  ;;  %v132_v30 = vsel %vm129_vm3, 1.0, %v131_v29 }
   0x8   :  { %442 = vmatprep.subr.bf16.mxu0 %v511_v0 }
   0x9   :  { %461 = vmatpush3.bf16.msra.mxu1 %v490_v12 }
   0xa   :  { %466 = vmatprep.subr.bf16.mxu1 %v511_v0 }
   0xb   :  { %443 = vmatpush3.bf16.msra.mxu0 %v483_v3 }
   0xc   :  { %444 = vmatprep.subr.bf16.mxu0 %v511_v0 }
   0xf   :  { %445 = vmatpush3.bf16.msra.mxu0 %v484_v4 }
  0x10   :  { %446 = vmatprep.subr.bf16.mxu0 %v511_v0 }
  0x13   :  { %447 = vmatpush3.bf16.msra.mxu0 %v485_v5 }
  0x14   :  { %448 = vmatprep.subr.bf16.mxu0 %v511_v0 }
  0x17   :  { %449 = vmatpush3.bf16.msra.mxu0 %v486_v6 }
  0x18   :  { %450 = vmatprep.subr.bf16.mxu0 %v511_v0 }
  0x1b   :  { %451 = vmatpush3.bf16.msra.mxu0 %v487_v7 }
  0x1c   :  { %452 = vmatprep.subr.bf16.mxu0 %v511_v0 }
  0x1f   :  { %453 = vmatpush3.bf16.msra.mxu0 %v488_v8 }
  0x22   :  { %455 = vmatmul.mubr.bf16.vlgmr.msra.gmra.mrb[0].mxu0 %v21_v10 }
  0xf5   :  { %v594_v13 = vpop.f32.mrb[0].mxu0 }
  0xf6   :  { %493 = vtanh.f32 %v594_v13  ;;  %v456_v14 = vpop.f32.mrb[1].mxu0 }
  0xf7   :  { %v123_v15 = vpop.f32.mrb[2].mxu0 }
  0xf8   :  { %v457_v16 = vpop.f32.mrb[3].mxu0 }
 0x100   :  { %v494_v17 = vpop.eup %493 }
 0x101   :  { %v133_v18 = vpack.c.bf16 %v494_v17, %v494_v17 }
 0x103   :  { %463 = vmatmul.mubr.msk.bf16.vlgmr.msra.gmra.mrb[0].mxu1 %vm150_vm1, %v133_v18 }
 0x104   :  { %470 = vmatprep.mubr.msk.bf16.mxu1 %vm512_vm0, %v511_v0 }
 0x1d6   :  { %v188_v20 = vpop.f32.mrb[0].mxu1 }
 0x1d7   :  { %v419_v21 = vmul.f32 -1.442695, %v188_v20  ;;  %v464_v22 = vpop.f32.mrb[1].mxu1 }
 0x1d8   :  { %v191_v23 = vpop.f32.mrb[2].mxu1 }
 0x1d9   :  { %495 = vpow2.f32 %v419_v21  ;;  %v465_v24 = vpop.f32.mrb[3].mxu1 }
 0x1e3   :  { %v496_v26 = vpop.eup %495 }
 0x1e4   :  { %v197_v28 = vadd.f32 1.0, %v496_v26  ;;  %v491_v26 = vld [vmem:[%s668_s3] sm:$0xff]  }
 0x1e5   :  { %467 = vmatpush3.bf16.msra.mxu1 %v491_v26 }
 0x1e6   :  { %497 = vrcp.f32 %v197_v28  ;;  %v492_v28 = vld [vmem:[%s668_s3 + $0x8] sm:$0xff]   ;;  %468 = vmatprep.subr.bf16.mxu1 %v511_v0 }
 0x1e9   :  { %469 = vmatpush3.bf16.msra.mxu1 %v492_v28 }
 0x1f0   :  { %v498_v31 = vpop.eup %497 }
 0x1f1   :  { %v607_v32 = vmul.f32 %v498_v31, %v132_v30 }
 0x1f3   :  { %241 = vrot.lane.b32.xlu0 %v607_v32, %s514_s0  ;;  %v205_v35 = vsel %vm204_vm5, %v607_v32, -inf }
 0x1f4   :  { %v206_v36 = vrot.slane %v205_v35, 4 }
 0x1f6   :  { %v207_v37 = vmax.f32 %v205_v35, %v206_v36 }
 0x1f8   :  { %v208_v38 = vrot.slane %v207_v37, 2 }
 0x1fa   :  { %v209_v39 = vmax.f32 %v207_v37, %v208_v38 }
 0x1fc   :  { %v210_v40 = vrot.slane %v209_v39, 1 }
 0x1fe   :  { %v211_v42 = vmax.f32 %v209_v39, %v210_v40 }
 0x200   :  { %vm212_vm6 = vcmp.ge.f32.partialorder %v607_v32, %v211_v42 }
 0x201   :  { %v213_v44 = vsel %vm212_vm6, %v612_v43, 8.0 }
 0x202   :  { %v214_v45 = vsel %vm204_vm5, %v213_v44, inf }
 0x203   :  { %v215_v46 = vrot.slane %v214_v45, 4 }
 0x205   :  { %v216_v47 = vmin.f32 %v214_v45, %v215_v46 }
 0x207   :  { %v217_v48 = vrot.slane %v216_v47, 2 }
 0x209   :  { %v218_v49 = vmin.f32 %v216_v47, %v217_v48 }
 0x20b   :  { %v219_v50 = vrot.slane %v218_v49, 1 }
 0x20d   :  { %v617_v51 = vmin.f32 %v218_v49, %v219_v50 }
 0x20f   :  { %vm221_vm7 = vcmp.eq.f32.partialorder %v612_v43, %v617_v51 }
 0x210   :  { %v222_v52 = vsel %vm221_vm7, -inf, %v607_v32 }
 0x211   :  { %v223_v53 = vsel %vm204_vm5, %v222_v52, -inf }
 0x212   :  { %v224_v54 = vrot.slane %v223_v53, 4 }
 0x214   :  { %v225_v55 = vmax.f32 %v223_v53, %v224_v54 }
 0x216   :  { %v226_v56 = vrot.slane %v225_v55, 2 }
 0x218   :  { %v227_v57 = vmax.f32 %v225_v55, %v226_v56 }
 0x21a   :  { %v228_v58 = vrot.slane %v227_v57, 1 }
 0x21c   :  { %v229_v59 = vmax.f32 %v227_v57, %v228_v58 }
 0x21e   :  { %vm230_vm8 = vcmp.ge.f32.partialorder %v222_v52, %v229_v59  ;;  %v266_v52 = vsel %vm221_vm7, 1, %v513_v19 }
 0x21f   :  { %v231_v60 = vsel %vm230_vm8, %v612_v43, 8.0 }
 0x220   :  { %v232_v61 = vsel %vm204_vm5, %v231_v60, inf }
 0x221   :  { %v233_v62 = vrot.slane %v232_v61, 4 }
 0x223   :  { %v234_v63 = vmin.f32 %v232_v61, %v233_v62 }
 0x225   :  { %v235_v1 = vrot.slane %v234_v63, 2 }
 0x227   :  { %v236_v2 = vmin.f32 %v234_v63, %v235_v1 }
 0x229   :  { %v237_v3 = vrot.slane %v236_v2, 1 }
 0x22b   :  { %v238_v4 = vmin.f32 %v236_v2, %v237_v3 }
 0x22d   :  { %vm239_vm9 = vcmp.eq.f32.partialorder %v612_v43, %v238_v4 }
 0x265   :  { %v242_v33 = vpop.permute.xlu0 %241 }
 0x266   :  { %v245_v34 = vsel %vm244_vm4, %v242_v33, 0.0 }
 0x267   :  { %246 = vadd.xlane.f32.xlu0 %v245_v34 }
 0x2f4   :  { %v247_v5 = vpop.xlane.xlu0 %246 }
 0x2f5   :  { %v248_v6 = vsel %vm221_vm7, %v247_v5, 0.0  ;;  %v257_v7 = vsel %vm239_vm9, %v247_v5, 0.0 }
 0x2f6   :  { %v249_v8 = vsel %vm204_vm5, %v248_v6, 0.0  ;;  %v258_v9 = vsel %vm204_vm5, %v257_v7, 0.0 }
 0x2f7   :  { %v250_v10 = vrot.slane %v249_v8, 4  ;;  %v259_v11 = vrot.slane %v258_v9, 4 }
 0x2f9   :  { %v251_v12 = vadd.f32 %v250_v10, %v249_v8  ;;  %v260_v14 = vadd.f32 %v259_v11, %v258_v9 }
 0x2fb   :  { %v252_v15 = vrot.slane %v251_v12, 2  ;;  %v261_v16 = vrot.slane %v260_v14, 2 }
 0x2fd   :  { %v262_v17 = vadd.f32 %v261_v16, %v260_v14  ;;  %v253_v18 = vadd.f32 %v252_v15, %v251_v12 }
 0x2ff   :  { %v254_v20 = vrot.slane %v253_v18, 1  ;;  %v263_v21 = vrot.slane %v262_v17, 1 }
 0x301   :  { %v255_v22 = vadd.f32 %v254_v20, %v253_v18  ;;  %v264_v24 = vadd.f32 %v263_v21, %v262_v17 }
 0x303   :  { %v256_v23 = vmul.f32 0.01, %v255_v22  ;;  %v265_v25 = vmul.f32 0.01, %v264_v24 }
 0x305   :  { %297 = vperm.xlu1 %479, %v256_v23  }
 0x309   :  { %303 = vperm.xlu1 %479, %v265_v25  }
 0x384   :  { %v298_v29 = vpop.permute.xlu1 %297 }
 0x385   :  { %v300_v30 = vadd.f32 %v298_v29, %v594_v13 }
 0x387   :  { %499 = vtanh.f32 %v300_v30 }
 0x388   :  { %v304_v31 = vpop.permute.xlu1 %303 }
 0x389   :  { %v306_v33 = vadd.f32 %v304_v31, %v594_v13  ;;  %v278_v13 = vsel %vm239_vm9, 1, %v513_v19 }
 0x38b   :  { %501 = vtanh.f32 %v306_v33 }
 0x391   :  { %v500_v34 = vpop.eup %499 }
 0x395   :  { %v502_v35 = vpop.eup %501 }
 0x396   :  { %v309_v36 = vpack.c.bf16 %v502_v35, %v500_v34 }
 0x398   :  { %315 = vrot.lane.b32.xlu1 %v309_v36, %s515_s17 }
 0x40a   :  { %v316_v37 = vpop.permute.xlu1 %315 }
 0x40b   :  { %471 = vmatmul.mubr.msk.bf16.vlgmr.msra.gmra.mrb[4].mxu1 %vm150_vm1, %v316_v37 }
 0x4de   :  { %v366_v0 = vpop.f32.mrb[4].mxu1 }
 0x4df   :  { %v374_v38 = vsel %vm373_vm10, %v366_v0, -1e+30  ;;  %v472_v39 = vpop.f32.mrb[5].mxu1 }
 0x4e0   :  { %376 = vmax.xlane.f32.xlu1 %v374_v38  ;;  %v369_v40 = vpop.f32.mrb[6].mxu1 }
 0x4e1   :  { %v375_v41 = vsel %vm373_vm10, %v369_v40, -1e+30  ;;  %v473_v42 = vpop.f32.mrb[7].mxu1 }
 0x4e2   :  { %378 = vmax.xlane.f32.xlu0 %v375_v41 }
 0x4f1   :  { %280 = vperm.xlu1 %479, %v278_v13  }
 0x56d   :  { %v377_v44 = vpop.xlane.xlu1 %376 }
 0x56e   :  { %v380_v45 = vsub.f32 %v374_v38, %v377_v44 }
 0x56f   :  { %v379_v46 = vpop.xlane.xlu0 %378 }
 0x570   :  { %v382_v47 = vmul.f32 1.442695, %v380_v45  ;;  %v381_v48 = vsub.f32 %v375_v41, %v379_v46 }
 0x571   :  { %v281_v53 = vpop.permute.xlu1 %280 }
 0x572   :  { %503 = vpow2.f32 %v382_v47  ;;  %v384_v27 = vmul.f32 1.442695, %v381_v48  ;;  %vm282_vm11 = vcmp.eq.s32.totalorder %v281_v53, 1 }
 0x573   :  { %v283_v55 = vsel %vm282_vm11, %v607_v32, 0.0 }
 0x574   :  { %505 = vpow2.f32 %v384_v27  ;;  %v284_v57 = vrot.slane %v283_v55, 4 }
 0x576   :  { %v285_v58 = vadd.f32 %v284_v57, %v283_v55 }
 0x578   :  { %v286_v62 = vrot.slane %v285_v58, 2 }
 0x57a   :  { %v287_v3 = vadd.f32 %v286_v62, %v285_v58 }
 0x57c   :  { %v504_v49 = vpop.eup %503  ;;  %v288_v8 = vrot.slane %v287_v3, 1 }
 0x57d   :  { %386 = vadd.xlane.f32.xlu0 %v504_v49 }
 0x57e   :  { %v506_v50 = vpop.eup %505  ;;  %v289_v10 = vadd.f32 %v288_v8, %v287_v3 }
 0x581   :  { %388 = vadd.xlane.f32.xlu0 %v506_v50 }
 0x597   :  { %268 = vperm.xlu0 %480, %v266_v52  }
 0x60a   :  { %v387_v54 = vpop.xlane.xlu0 %386 }
 0x60b   :  { %507 = vlog2.f32 %v387_v54 }
 0x60e   :  { %v389_v56 = vpop.xlane.xlu0 %388 }
 0x60f   :  { %509 = vlog2.f32 %v389_v56 }
 0x615   :  { %v508_v59 = vpop.eup %507 }
 0x616   :  { %v391_v60 = vmul.f32 0.6931472, %v508_v59  ;;  %v269_v61 = vpop.permute.xlu0 %268 }
 0x617   :  { %vm270_vm12 = vcmp.eq.s32.totalorder %v269_v61, 1 }
 0x618   :  { %v394_v63 = vadd.f32 %v391_v60, %v377_v44  ;;  %v271_v43 = vsel %vm270_vm12, %v607_v32, 0.0 }
 0x619   :  { %v510_v19 = vpop.eup %509  ;;  %v272_v51 = vrot.slane %v271_v43, 4 }
 0x61a   :  { %v396_v1 = vsub.f32 %v374_v38, %v394_v63  ;;  %v393_v2 = vmul.f32 0.6931472, %v510_v19 }
 0x61b   :  { %v273_v4 = vadd.f32 %v272_v51, %v271_v43 }
 0x61c   :  { %398 = vst [vmem:[%s669_s5] sm:$0xff] %v396_v1  ;;  %v395_v5 = vadd.f32 %v393_v2, %v379_v46 }
 0x61d   :  { %v274_v6 = vrot.slane %v273_v4, 2 }
 0x61e   :  { %v397_v7 = vsub.f32 %v375_v41, %v395_v5 }
 0x61f   :  { %v275_v9 = vadd.f32 %v274_v6, %v273_v4 }
 0x620   :  { %399 = vst [vmem:[%s669_s5 + $0x8] sm:$0xff] %v397_v7 }
 0x621   :  { %v276_v32 = vrot.slane %v275_v9, 1 }
 0x623   :  { %v277_v11 = vadd.f32 %v276_v32, %v275_v9 }
 0x625   :  { %v291_v12 = vsel %vm290_vm13, %v277_v11, %v289_v10 }
 0x626   :  { %v293_v14 = vsel %vm292_vm14, %v291_v12, 0.0 }
 0x627   :  { %294 = vst [vmem:[%s670_s4] sm:$0xff] %v293_v14 }

</bundles_post_ra>
